<compile_context>
chip_gen: v7x
topology: tpu7x:2x2x1
jax: 0.10.0
libtpu: 0.0.40
codegen_flags: <defaults>
</compile_context>

<pallas_src>
import jax
import jax.numpy as jnp
from jax.experimental import pallas as pl
from jax.experimental.pallas import tpu as pltpu


# --------------------------------------------------------------------------- #
# Kernel
# --------------------------------------------------------------------------- #
def temporal_attention_kernel(seq_ref, len_ref, w1_ref, b1_ref, w2t_ref, b2_ref, out_ref):
    Bb, T, F = seq_ref.shape
    H = w1_ref.shape[1]

    seq = seq_ref[...]                                        # (Bb, T, F)

    # ---- First Linear on the MXU: flatten (Bb, T, F) -> (Bb*T, F). T is padded
    # to a multiple of 8 by the wrapper, so this reshape (and the one back below)
    # does not cross (8,128) tile boundaries -> no VMEM relayout copy.
    seq2d = seq.reshape(Bb * T, F)
    h = jnp.tanh(
        jnp.dot(seq2d, w1_ref[...], preferred_element_type=jnp.float32)
        + b1_ref[...]
    )                                                         # (Bb*T, H) f32
    h3 = h.reshape(Bb, T, H)

    # ---- Second Linear (output width 1): VPU multiply + reduce with keepdims.
    # The trailing singleton dim keeps T on the sublane axis, matching seq's
    # layout all the way to the weighted sum (no lane<->sublane relayouts).
    scores = (
        jnp.sum(h3 * w2t_ref[...].reshape(1, 1, H), axis=-1, keepdims=True)
        + b2_ref[...].reshape(1, 1, 1)
    )                                                         # (Bb, T, 1)

    # ---- Length masking: t >= lengths[b] -> -1e9 (also masks host-side T padding).
    t_idx = jax.lax.broadcasted_iota(jnp.int32, (Bb, T, 1), 1)
    mask = t_idx >= len_ref[...].reshape(Bb, 1, 1)
    scores = jnp.where(mask, jnp.float32(-1.0e9), scores)

    # ---- Softmax over time (axis=1, sublane reduce). Approx reciprocal -> EUP slot.
    m = jnp.max(scores, axis=1, keepdims=True)                # (Bb, 1, 1)
    e = jnp.exp(scores - m)                                   # (Bb, T, 1)
    denom = jnp.sum(e, axis=1, keepdims=True)                 # (Bb, 1, 1)
    weights = e * pl.reciprocal(denom, approx=True)           # (Bb, T, 1)

    # ---- context[b, f] = sum_t weights[b, t] * seq[b, t, f]
    ctx = jnp.sum(weights * seq, axis=1)                      # (Bb, F) f32
    out_ref[...] = ctx.astype(out_ref.dtype)


# --------------------------------------------------------------------------- #
# Tiling helpers (generation-aware)
# --------------------------------------------------------------------------- #
def _vmem_capacity_bytes():
    """Physical VMEM of the current TPU generation (128 MiB v5e/v6e, 64 MiB v7x)."""
    try:
        return int(pltpu.get_tpu_info().vmem_capacity_bytes)
    except Exception:
        return 64 * 1024 * 1024  # conservative fallback (v7x-sized)


def _round8_up(x):
    return max(8, ((x + 7) // 8) * 8)


def _choose_block_b(B, T, F, H, vmem_cap, vmem_budget_bytes=None, max_bb=None):
    """Pick the batch tile Bb.

    * budget scales with the generation's physical VMEM (not a hardcoded 20 MiB),
    * per-row estimate includes the weights*seq intermediate and softmax temps,
    * at least 2 grid steps for moderate batches (so v7x's 2 TensorCores both get
      work via dimension_semantics=("parallel",)) and ~8 steps for large batches
      (keeps pipeline fill/drain exposure small),
    * Bb stays a multiple of 8 whenever the batch is actually tiled.
    """
    if vmem_budget_bytes is None:
        # ~40% of physical VMEM for the pipelined seq/out buffers + activations;
        # the rest is headroom for double-buffering bookkeeping and compiler temps.
        vmem_budget_bytes = int(vmem_cap * 0.4)
    if max_bb is None:
        max_bb = 1024 if vmem_cap >= 96 * 1024 * 1024 else 256

    # f32 bytes live per batch row: double-buffered seq in, double-buffered out,
    # the h activation, the weights*seq product intermediate, softmax temps.
    per_row_bytes = 4 * (2 * T * F + 2 * F + T * H + 2 * T * F + 4 * T)
    bb = max(1, min(max_bb, vmem_budget_bytes // per_row_bytes))

    # Grid-step targets: >=8 steps for big batches, >=2 for moderate ones.
    if B >= 64:
        target_steps = 8
    elif B >= 16:
        target_steps = 2
    else:
        target_steps = 1
    if target_steps > 1:
        bb_by_steps = _round8_up(-(-B // target_steps))
        bb = min(bb, bb_by_steps)

    if bb >= B:
        return B                       # one block over the whole (small) batch
    return max(8, (bb // 8) * 8)       # multiple of 8 -> sublane-aligned tiles


# --------------------------------------------------------------------------- #
# Wrapper
# --------------------------------------------------------------------------- #
def temporal_attention(sequence, w1, b1, w2, b2, lengths=None, block_b=None):
    """sequence: (B, T, F) float32/bfloat16; lengths: optional (B,) int.

    Returns the attention context of shape (B, F), matching the PyTorch module.
    """
    B, T, F = sequence.shape
    H = w1.shape[1]

    # lengths default must be the ORIGINAL T (pre-padding) so padded steps stay masked.
    if lengths is None:
        lengths = jnp.full((B,), T, dtype=jnp.int32)  # == "no masking" for real steps
    lengths = lengths.astype(jnp.int32)

    # ---- pad T to a multiple of 8 so in-kernel reshapes are layout no-ops ----
    Tp = ((T + 7) // 8) * 8
    if Tp != T:
        sequence = jnp.concatenate(
            [sequence, jnp.zeros((B, Tp - T, F), sequence.dtype)], axis=1)

    vmem_cap = _vmem_capacity_bytes()
    Bb = block_b if block_b is not None else _choose_block_b(B, Tp, F, H, vmem_cap)

    # ---- pad B to a multiple of Bb (padded rows: zeros, full length, sliced off) ----
    Bp = -(-B // Bb) * Bb
    if Bp != B:
        pad = Bp - B
        sequence = jnp.concatenate(
            [sequence, jnp.zeros((pad, Tp, F), sequence.dtype)], axis=0)
        lengths = jnp.concatenate(
            [lengths, jnp.full((pad,), T, dtype=jnp.int32)], axis=0)

    lengths2d = lengths.reshape(Bp, 1)
    b1_2d = b1.reshape(1, H).astype(jnp.float32)
    w2t = w2.reshape(1, H).astype(jnp.float32)   # transposed second-layer weight (VPU)
    b2_2d = b2.reshape(1, 1).astype(jnp.float32)

    # vmem_limit: ~1.5-2x headroom over the tiling budget, capped well below physical.
    vmem_limit = min(int(vmem_cap * 0.75), 100 * 1024 * 1024)

    out = pl.pallas_call(
        temporal_attention_kernel,
        out_shape=jax.ShapeDtypeStruct((Bp, F), sequence.dtype),
        grid=(Bp // Bb,),
        in_specs=[
            pl.BlockSpec((Bb, Tp, F), lambda i: (i, 0, 0)),   # sequence
            pl.BlockSpec((Bb, 1), lambda i: (i, 0)),          # lengths
            pl.BlockSpec((F, H), lambda i: (0, 0)),           # w1
            pl.BlockSpec((1, H), lambda i: (0, 0)),           # b1
            pl.BlockSpec((1, H), lambda i: (0, 0)),           # w2^T
            pl.BlockSpec((1, 1), lambda i: (0, 0)),           # b2
        ],
        out_specs=pl.BlockSpec((Bb, F), lambda i: (i, 0)),    # lane-dense 2D output
        compiler_params=pltpu.CompilerParams(
            dimension_semantics=("parallel",),
            vmem_limit_bytes=vmem_limit,
        ),
    )(sequence, lengths2d, w1.astype(jnp.float32), b1_2d, w2t, b2_2d)
    return out[:B]


# --------------------------------------------------------------------------- #
# Pure-JAX reference mirroring the PyTorch forward
# --------------------------------------------------------------------------- #
def temporal_attention_ref(sequence, w1, b1, w2, b2, lengths=None):
    scores = jnp.tanh(sequence @ w1 + b1) @ w2 + b2           # (B, T, 1)
    if lengths is not None:
        B, T, _ = sequence.shape
        mask = jnp.arange(T)[None, :] >= lengths[:, None]     # (B, T)
        scores = jnp.where(mask[:, :, None], -1.0e9, scores)
    weights = jax.nn.softmax(scores, axis=1)
    return jnp.sum(weights * sequence, axis=1)                # (B, F)


if __name__ == "__main__":
    key = jax.random.PRNGKey(0)
    k_seq, k_w1, k_b1, k_w2, k_b2, k_seq2 = jax.random.split(key, 6)

    B, T, F, H = 2, 8, 32, 32
    sequence = jax.random.normal(k_seq, (B, T, F), dtype=jnp.float32)
    # Synthetic parameters (shapes from nn.Linear(F, H) and nn.Linear(H, 1)).
    w1 = jax.random.normal(k_w1, (F, H), dtype=jnp.float32) * 0.1
    b1 = jax.random.normal(k_b1, (H,), dtype=jnp.float32) * 0.1
    w2 = jax.random.normal(k_w2, (H, 1), dtype=jnp.float32) * 0.1
    b2 = jax.random.normal(k_b2, (1,), dtype=jnp.float32) * 0.1

    # Tolerance 5e-3: softmax denominator uses the EUP approximate reciprocal.
    # --- with lengths (masked softmax path) ---
    lengths = jnp.array([T, 5], dtype=jnp.int32)
    out = jax.block_until_ready(temporal_attention(sequence, w1, b1, w2, b2, lengths))
    ref = temporal_attention_ref(sequence, w1, b1, w2, b2, lengths)
    assert out.shape == (B, F)
    assert jnp.allclose(out, ref, atol=5e-3, rtol=5e-3)

    # --- without lengths (lengths=None path) ---
    out_nl = jax.block_until_ready(temporal_attention(sequence, w1, b1, w2, b2, None))
    ref_nl = temporal_attention_ref(sequence, w1, b1, w2, b2, None)
    assert jnp.allclose(out_nl, ref_nl, atol=5e-3, rtol=5e-3)

    # --- T not a multiple of 8 (exercises the host-side time padding path) ---
    T2 = 6
    sequence2 = jax.random.normal(k_seq2, (B, T2, F), dtype=jnp.float32)
    lengths2 = jnp.array([T2, 3], dtype=jnp.int32)
    out_p = jax.block_until_ready(temporal_attention(sequence2, w1, b1, w2, b2, lengths2))
    ref_p = temporal_attention_ref(sequence2, w1, b1, w2, b2, lengths2)
    assert jnp.allclose(out_p, ref_p, atol=5e-3, rtol=5e-3)
    out_pn = jax.block_until_ready(temporal_attention(sequence2, w1, b1, w2, b2, None))
    ref_pn = temporal_attention_ref(sequence2, w1, b1, w2, b2, None)
    assert jnp.allclose(out_pn, ref_pn, atol=5e-3, rtol=5e-3)

    print("KERNEL_OK")
</pallas_src>

<mosaic_0001>
module attributes {stable_mosaic.version = 11 : i64} {
  func.func @temporal_attention_kernel(%arg0: i32, %arg1: memref<2x8x32xf32, #tpu.memory_space<vmem>>, %arg2: memref<2x1xi32, #tpu.memory_space<vmem>>, %arg3: memref<32x32xf32, #tpu.memory_space<vmem>>, %arg4: memref<1x32xf32, #tpu.memory_space<vmem>>, %arg5: memref<1x32xf32, #tpu.memory_space<vmem>>, %arg6: memref<1x1xf32, #tpu.memory_space<vmem>>, %arg7: memref<2x32xf32, #tpu.memory_space<vmem>>) attributes {dimension_semantics = [#tpu.dimension_semantics<parallel>], iteration_bounds = array<i64: 1>, scalar_prefetch = 0 : i64, scratch_operands = 0 : i64, tpu.core_type = #tpu.core_type<tc>, window_params = [{transform_indices = @transform_0, window_bounds = array<i64: 2, 8, 32>}, {transform_indices = @transform_1, window_bounds = array<i64: 2, 1>}, {pipeline_mode = #tpu.pipeline_mode<synchronous>, transform_indices = @transform_2, window_bounds = array<i64: 32, 32>}, {pipeline_mode = #tpu.pipeline_mode<synchronous>, transform_indices = @transform_3, window_bounds = array<i64: 1, 32>}, {pipeline_mode = #tpu.pipeline_mode<synchronous>, transform_indices = @transform_4, window_bounds = array<i64: 1, 32>}, {pipeline_mode = #tpu.pipeline_mode<synchronous>, transform_indices = @transform_5, window_bounds = array<i64: 1, 1>}, {transform_indices = @transform_6, window_bounds = array<i64: 2, 32>}]} {
    %c0 = arith.constant 0 : index
    %c0_0 = arith.constant 0 : index
    %c0_1 = arith.constant 0 : index
    %0 = vector.load %arg1[%c0, %c0_0, %c0_1] : memref<2x8x32xf32, #tpu.memory_space<vmem>>, vector<2x8x32xf32>
    %1 = vector.shape_cast %0 : vector<2x8x32xf32> to vector<16x32xf32>
    %c0_2 = arith.constant 0 : index
    %c0_3 = arith.constant 0 : index
    %2 = vector.load %arg3[%c0_2, %c0_3] : memref<32x32xf32, #tpu.memory_space<vmem>>, vector<32x32xf32>
    %cst = arith.constant dense<0.000000e+00> : vector<16x32xf32>
    %3 = tpu.matmul %1, %2, %cst {dimension_numbers = #tpu.dot_dimension_numbers<[1], [0], [0], [1], [0, 0, 1, 1], [], []>} : vector<16x32xf32>, vector<32x32xf32>, vector<16x32xf32> -> vector<16x32xf32>
    %c0_4 = arith.constant 0 : index
    %c0_5 = arith.constant 0 : index
    %4 = vector.load %arg4[%c0_4, %c0_5] : memref<1x32xf32, #tpu.memory_space<vmem>>, vector<1x32xf32>
    %5 = vector.broadcast %4 : vector<1x32xf32> to vector<16x32xf32>
    %6 = arith.addf %3, %5 : vector<16x32xf32>
    %7 = math.tanh %6 : vector<16x32xf32>
    %8 = vector.shape_cast %7 : vector<16x32xf32> to vector<2x8x32xf32>
    %c0_6 = arith.constant 0 : index
    %c0_7 = arith.constant 0 : index
    %9 = vector.load %arg5[%c0_6, %c0_7] : memref<1x32xf32, #tpu.memory_space<vmem>>, vector<1x32xf32>
    %10 = vector.shape_cast %9 : vector<1x32xf32> to vector<1x1x32xf32>
    %11 = vector.broadcast %10 : vector<1x1x32xf32> to vector<2x8x32xf32>
    %12 = arith.mulf %8, %11 : vector<2x8x32xf32>
    %cst_8 = arith.constant dense<0.000000e+00> : vector<2x8xf32>
    %13 = vector.multi_reduction <add>, %12, %cst_8 [2] : vector<2x8x32xf32> to vector<2x8xf32>
    %14 = vector.shape_cast %13 : vector<2x8xf32> to vector<2x8x1xf32>
    %c0_9 = arith.constant 0 : index
    %c0_10 = arith.constant 0 : index
    %15 = vector.load %arg6[%c0_9, %c0_10] : memref<1x1xf32, #tpu.memory_space<vmem>>, vector<1x1xf32>
    %16 = vector.shape_cast %15 : vector<1x1xf32> to vector<1x1x1xf32>
    %17 = vector.broadcast %16 : vector<1x1x1xf32> to vector<2x8x1xf32>
    %18 = arith.addf %14, %17 : vector<2x8x1xf32>
    %19 = tpu.iota {dimensions = array<i32: 1>} : vector<2x8x1xi32>
    %c0_11 = arith.constant 0 : index
    %c0_12 = arith.constant 0 : index
    %20 = vector.load %arg2[%c0_11, %c0_12] : memref<2x1xi32, #tpu.memory_space<vmem>>, vector<2x1xi32>
    %21 = vector.shape_cast %20 : vector<2x1xi32> to vector<2x1x1xi32>
    %22 = vector.broadcast %21 : vector<2x1x1xi32> to vector<2x8x1xi32>
    %23 = arith.cmpi sge, %19, %22 : vector<2x8x1xi32>
    %cst_13 = arith.constant -1.000000e+09 : f32
    %24 = vector.broadcast %cst_13 : f32 to vector<2x8x1xf32>
    %25 = arith.select %23, %24, %18 : vector<2x8x1xi1>, vector<2x8x1xf32>
    %cst_14 = arith.constant dense<0xFF800000> : vector<2x1xf32>
    %26 = vector.multi_reduction <maximumf>, %25, %cst_14 [1] : vector<2x8x1xf32> to vector<2x1xf32>
    %27 = vector.shape_cast %26 : vector<2x1xf32> to vector<2x1x1xf32>
    %28 = vector.broadcast %27 : vector<2x1x1xf32> to vector<2x8x1xf32>
    %29 = arith.subf %25, %28 : vector<2x8x1xf32>
    %30 = math.exp %29 : vector<2x8x1xf32>
    %cst_15 = arith.constant dense<0.000000e+00> : vector<2x1xf32>
    %31 = vector.multi_reduction <add>, %30, %cst_15 [1] : vector<2x8x1xf32> to vector<2x1xf32>
    %32 = vector.shape_cast %31 : vector<2x1xf32> to vector<2x1x1xf32>
    %33 = tpu.reciprocal %32 {approx = true} : vector<2x1x1xf32> -> vector<2x1x1xf32>
    %34 = vector.broadcast %33 : vector<2x1x1xf32> to vector<2x8x1xf32>
    %35 = arith.mulf %30, %34 : vector<2x8x1xf32>
    %36 = vector.broadcast %35 : vector<2x8x1xf32> to vector<2x8x32xf32>
    %37 = arith.mulf %36, %0 : vector<2x8x32xf32>
    %cst_16 = arith.constant dense<0.000000e+00> : vector<2x32xf32>
    %38 = vector.multi_reduction <add>, %37, %cst_16 [1] : vector<2x8x32xf32> to vector<2x32xf32>
    %c0_17 = arith.constant 0 : index
    %c0_18 = arith.constant 0 : index
    %39 = vector.load %arg7[%c0_17, %c0_18] : memref<2x32xf32, #tpu.memory_space<vmem>>, vector<2x32xf32>
    tpu.vector_store %arg7[%c0_17, %c0_18], %38 {strides = array<i32>} : memref<2x32xf32, #tpu.memory_space<vmem>>, vector<2x32xf32>,
    return
  }
  func.func @transform_0(%arg0: i32) -> (i32, i32, i32) {
    %c0_i32 = arith.constant 0 : i32
    %c0_i32_0 = arith.constant 0 : i32
    %c0_i32_1 = arith.constant 0 : i32
    return %arg0, %c0_i32, %c0_i32_0 : i32, i32, i32
  }
  func.func @transform_1(%arg0: i32) -> (i32, i32) {
    %c0_i32 = arith.constant 0 : i32
    %c0_i32_0 = arith.constant 0 : i32
    return %arg0, %c0_i32 : i32, i32
  }
  func.func @transform_2(%arg0: i32) -> (i32, i32) {
    %c0_i32 = arith.constant 0 : i32
    %c0_i32_0 = arith.constant 0 : i32
    %c0_i32_1 = arith.constant 0 : i32
    return %c0_i32, %c0_i32_0 : i32, i32
  }
  func.func @transform_3(%arg0: i32) -> (i32, i32) {
    %c0_i32 = arith.constant 0 : i32
    %c0_i32_0 = arith.constant 0 : i32
    %c0_i32_1 = arith.constant 0 : i32
    return %c0_i32, %c0_i32_0 : i32, i32
  }
  func.func @transform_4(%arg0: i32) -> (i32, i32) {
    %c0_i32 = arith.constant 0 : i32
    %c0_i32_0 = arith.constant 0 : i32
    %c0_i32_1 = arith.constant 0 : i32
    return %c0_i32, %c0_i32_0 : i32, i32
  }
  func.func @transform_5(%arg0: i32) -> (i32, i32) {
    %c0_i32 = arith.constant 0 : i32
    %c0_i32_0 = arith.constant 0 : i32
    %c0_i32_1 = arith.constant 0 : i32
    return %c0_i32, %c0_i32_0 : i32, i32
  }
  func.func @transform_6(%arg0: i32) -> (i32, i32) {
    %c0_i32 = arith.constant 0 : i32
    %c0_i32_0 = arith.constant 0 : i32
    return %arg0, %c0_i32 : i32, i32
  }
}

</mosaic_0001>

<bundles_post_ra>
// kernel: tpu_custom_call.1
= control target key start
LH: loop header
LB: loop body
LE: loop exit
PB: predicated region body
PF: predicated region fallthrough
CT: control target
= control target key end

     0   :  { %s532_s0 = inlined_call_operand.hbm [shape: f32[2,8,32], index: 0, kind: input, shape index: {}]   ;;  %s533_s1 = inlined_call_operand.vmem [shape: s32[2,1], index: 1, kind: input, shape index: {}]   ;;  %s534_s2 = inlined_call_operand.hbm [shape: f32[32,32], index: 2, kind: input, shape index: {}]   ;;  %s535_s3 = inlined_call_operand.vmem [shape: f32[1,32], index: 3, kind: input, shape index: {}]   ;;  %s536_s4 = inlined_call_operand.vmem [shape: f32[1,32], index: 4, kind: input, shape index: {}]   ;;  %s537_s5 = inlined_call_operand.<no memory space> [shape: f32[1,1], index: 5, kind: input, shape index: {}]   ;;  %s538_s6 = inlined_call_operand.hbm [shape: f32[2,32], index: 6, kind: output, shape index: {}]  }
   0x1   :  { %v11_v0 = vstv %s537_s5 }
   0x2   :  { %12 = vst [vmem:[#allocation2] sm:$0x1] %v11_v0 }
   0x3   :  { %13 = vsyncpa [#allocation4], 0 }
   0x4   :  { %14 = vsyncpa [#allocation7], 0 }
   0x5   :  { %15 = vsyncpa [#allocation5], 0  ;;  %s424_s23 = smov [#allocation3]   ;;  %s352_s27 = scalar_lea.hbm %s532_s0, 256 }
   0x6   :  { %s21_s24 = sshll.u32 %s424_s23, 4  ;;  %p353_p0 = scmp.ne.s32.totalorder %s532_s0, %s352_s27  ;;  %s22_s24 = int_to_ptr.vmem [resolvable:$true] %s21_s24 }
   0x7   :  { %p356_p1 = scmp.lt.u32.totalorder %s352_s27, %s532_s0 }
   0x9   :  { %p358_p2 = pnand %p356_p1, %p353_p0 }
   0xb   :  { %361 = shalt.err (!%p358_p2)
}
   0xc   :  { %s362_s5 = scalar_lea.vmem %s22_s24, 256  ;;  %p367_p4 = scmp.lt.s32.totalorder %s22_s24, %s22_s24 }
   0xd   :  { %p363_p3 = scmp.ne.s32.totalorder %s22_s24, %s362_s5  ;;  %p368_p5 = scmp.lt.s32.totalorder %s362_s5, %s362_s5 }
   0xf   :  { %p369_p6 = por %p368_p5, %p367_p4 }
  0x11   :  { %p370_p7 = pnand %p369_p6, %p363_p3 }
  0x13   :  { %373 = shalt.err (!%p370_p7)
}
  0x14   :  { %s425_s8 = smov 128   ;;  %s426_s9 = smov 8  }
  0x15   :  { %27 = dma.hbm_to_vmem [thread:$0]  %s532_s0, 256, %s22_s24, [#allocation4], %s425_s8, %s425_s8, %s426_s9  }
  0x16   :  { %s427_s12 = smov [#allocation6]   ;;  %s374_s16 = scalar_lea.hbm %s534_s2, 512 }
  0x17   :  { %s35_s13 = sshll.u32 %s427_s12, 4  ;;  %p375_p8 = scmp.ne.s32.totalorder %s534_s2, %s374_s16  ;;  %s36_s13 = int_to_ptr.vmem [resolvable:$true] %s35_s13 }
  0x18   :  { %p378_p9 = scmp.lt.u32.totalorder %s374_s16, %s534_s2 }
  0x1a   :  { %p380_p10 = pnand %p378_p9, %p375_p8 }
  0x1c   :  { %383 = shalt.err (!%p380_p10)
}
  0x1d   :  { %s384_s21 = scalar_lea.vmem %s36_s13, 512  ;;  %p389_p12 = scmp.lt.s32.totalorder %s36_s13, %s36_s13 }
  0x1e   :  { %p385_p11 = scmp.ne.s32.totalorder %s36_s13, %s384_s21  ;;  %p390_p13 = scmp.lt.s32.totalorder %s384_s21, %s384_s21 }
  0x20   :  { %p391_p0 = por %p390_p13, %p389_p12 }
  0x22   :  { %p392_p1 = pnand %p391_p0, %p385_p11 }
  0x24   :  { %395 = shalt.err (!%p392_p1)
}
  0x25   :  { %41 = dma.hbm_to_vmem [thread:$0]  %s534_s2, 512, %s36_s13, [#allocation7], %s425_s8, %s425_s8, %s426_s9  }
  0x26   :  { %418 = dma.done.wait [#allocation4], 256  }
  0x27   :  { %419 = vsyncadd [#allocation4], 4294967040 }
  0x28   :  { %420 = dma.done.wait [#allocation7], 512  }
  0x29   :  { %421 = vsyncadd [#allocation7], 4294966784  ;;  %vm67_vm0 = vcmask 261120   ;;  %v56_v1 = vld [vmem:[#allocation6] sm:$0xff]  ;;  %v57_v2 = vld [vmem:[#allocation6 + $0x8] sm:$0xff]  ;;  %v428_v21 = vmov 0   ;;  %v175_v22 = vlaneseq }
  0x2a   :  { %v58_v3 = vld [vmem:[#allocation6 + $0x10] sm:$0xff]  ;;  %v323_v4 = vpack.c.bf16 %v57_v2, %v56_v1  ;;  %v59_v5 = vld [vmem:[#allocation6 + $0x18] sm:$0xff]  ;;  %v300_v9 = vld [vmem:[%s535_s3] ss:$0 sm:$0xff]  ;;  %338 = vset.pattern.permute.xlu1 %v428_v21  ;;  %339 = vset.pattern.permute.xlu0 %v428_v21  ;;  %v429_v23 = vmov 1966171168  }
  0x2b   :  { %v493_v6 = vld [vmem:[#allocation3] sm:$0xff]  ;;  %v327_v7 = vpack.c.bf16 %v59_v5, %v58_v3  ;;  %v497_v8 = vld [vmem:[#allocation3 + $0x8] sm:$0xff]  ;;  %v303_v14 = vld [vmem:[%s536_s4] ss:$0 sm:$0xff]  ;;  %v187_v24 = vunpack.c.l.s4 %v429_v23  ;;  %v176_v25 = vshrl.u32 %v175_v22, 7  ;;  %vm212_vm2 = vcmask 7168  }
  0x2c   :  { %320 = vmatprep.mubr.msk.f32.mxu0 %vm67_vm0, %v493_v6  ;;  %324 = vmatprep.subr.bf16.mxu0 %v323_v4  ;;  %v305_v28 = vld.sshfl [vmem:[%s533_s1] sm:$0x11 pattern:$0x75316420]  ;;  %s430_s1 = smov [#allocation8]   ;;  %vm279_vm4 = vcmask 1041409  }
  0x2d   :  { %326 = vmatpush3.bf16.msra.mxu0 %v323_v4  ;;  %v188_v26 = vunpack.c.0.s8 %v187_v24  ;;  %v202_v30 = vsub.s32 0, %v176_v25  ;;  %v185_v31 = vcombine.high %v305_v28, %v305_v28  ;;  %v304_v34 = vld [vmem:[#allocation2] ss:$0 sm:$0xff]  ;;  %s290_s26 = sshll.u32 %s430_s1, 4  ;;  %vm282_vm5 = vcmask 254976   ;;  %s291_s26 = int_to_ptr.vmem [resolvable:$true] %s290_s26 }
  0x2e   :  { %328 = vmatprep.subr.bf16.mxu0 %v327_v7  ;;  %s396_s27 = scalar_lea.vmem %s291_s26, 32  ;;  %p401_p3 = scmp.lt.s32.totalorder %s291_s26, %s291_s26 }
  0x2f   :  { %v191_v27 = vsub.s32 %v188_v26, %v176_v25  ;;  %p397_p2 = scmp.ne.s32.totalorder %s291_s26, %s396_s27  ;;  %p402_p4 = scmp.lt.s32.totalorder %s396_s27, %s396_s27 }
  0x31   :  { %330 = vmatpush3.bf16.msra.mxu0 %v327_v7  ;;  %v192_v29 = vrot.slane %v305_v28, %v191_v27  ;;  %v199_v33 = vrot.slane %v185_v31, %v191_v27  ;;  %p403_p5 = por %p402_p4, %p401_p3 }
  0x33   :  { %v203_v32 = vrot.slane %v192_v29, %v202_v30  ;;  %v207_v36 = vrot.slane %v199_v33, %v202_v30  ;;  %p404_p6 = pnand %p403_p5, %p397_p2 }
  0x34   :  { %321 = vmatmul.mubr.msk.f32.vlgmr.msra.gmra.mrb[0].mxu0 %vm67_vm0, %v497_v8 }
  0x35   :  { %vm208_vm1 = vcmp.ge.s32.totalorder %v176_v25, %v203_v32  ;;  %vm209_vm3 = vcmp.ge.s32.totalorder %v176_v25, %v207_v36 }
 0x107   :  { %v322_v10 = vpop.f32.mrb[0].mxu0 }
 0x108   :  { %v146_v11 = vadd.f32 %v322_v10, %v300_v9  ;;  %v140_v12 = vpop.f32.mrb[1].mxu0 }
 0x109   :  { %v141_v13 = vadd.f32 %v300_v9, %v140_v12 }
 0x10a   :  { %340 = vtanh.f32 %v146_v11 }
 0x10b   :  { %342 = vtanh.f32 %v141_v13 }
 0x114   :  { %v341_v15 = vpop.eup %340 }
 0x115   :  { %v343_v16 = vpop.eup %342  ;;  %v159_v19 = vmul.f32 %v341_v15, %v303_v14 }
 0x116   :  { %v158_v17 = vmul.f32 %v343_v16, %v303_v14 }
 0x117   :  { %v163_v20 = vsel %vm67_vm0, %v159_v19, 0.0 }
 0x118   :  { %v160_v18 = vsel %vm67_vm0, %v158_v17, 0.0 }
 0x119   :  { %161 = vadd.xlane.f32.xlu0 %v160_v18 }
 0x11d   :  { %164 = vadd.xlane.f32.xlu0 %v163_v20 }
 0x1a6   :  { %v162_v35 = vpop.xlane.xlu0 %161 }
 0x1a7   :  { %v173_v37 = vadd.f32 %v304_v34, %v162_v35 }
 0x1a9   :  { %v210_v38 = vsel %vm208_vm1, -1e+09, %v173_v37 }
 0x1aa   :  { %v213_v39 = vsel %vm212_vm2, %v210_v38, -inf  ;;  %v165_v40 = vpop.xlane.xlu0 %164 }
 0x1ab   :  { %v214_v41 = vrot.slane %v213_v39, 4  ;;  %v174_v42 = vadd.f32 %v304_v34, %v165_v40 }
 0x1ad   :  { %v215_v43 = vmax.f32 %v213_v39, %v214_v41  ;;  %v211_v44 = vsel %vm209_vm3, -1e+09, %v174_v42 }
 0x1ae   :  { %v220_v45 = vsel %vm212_vm2, %v211_v44, -inf }
 0x1af   :  { %v216_v46 = vrot.slane %v215_v43, 2  ;;  %v221_v47 = vrot.slane %v220_v45, 4 }
 0x1b1   :  { %v217_v48 = vmax.f32 %v215_v43, %v216_v46  ;;  %v222_v49 = vmax.f32 %v220_v45, %v221_v47 }
 0x1b3   :  { %v218_v50 = vrot.slane %v217_v48, 1  ;;  %v223_v51 = vrot.slane %v222_v49, 2 }
 0x1b5   :  { %v219_v52 = vmax.f32 %v217_v48, %v218_v50  ;;  %v224_v53 = vmax.f32 %v222_v49, %v223_v51 }
 0x1b7   :  { %v227_v54 = vsub.f32 %v210_v38, %v219_v52  ;;  %v225_v55 = vrot.slane %v224_v53, 1 }
 0x1b9   :  { %v229_v56 = vmul.f32 1.442695, %v227_v54  ;;  %v226_v57 = vmax.f32 %v224_v53, %v225_v55 }
 0x1bb   :  { %344 = vpow2.f32 %v229_v56  ;;  %v228_v58 = vsub.f32 %v211_v44, %v226_v57 }
 0x1bd   :  { %v231_v59 = vmul.f32 1.442695, %v228_v58 }
 0x1bf   :  { %346 = vpow2.f32 %v231_v59 }
 0x1c5   :  { %v345_v60 = vpop.eup %344 }
 0x1c6   :  { %v233_v61 = vsel %vm212_vm2, %v345_v60, 0.0 }
 0x1c7   :  { %v234_v62 = vrot.slane %v233_v61, 4 }
 0x1c9   :  { %v347_v63 = vpop.eup %346  ;;  %v235_v0 = vadd.f32 %v234_v62, %v233_v61 }
 0x1ca   :  { %v240_v1 = vsel %vm212_vm2, %v347_v63, 0.0 }
 0x1cb   :  { %v236_v2 = vrot.slane %v235_v0, 2  ;;  %v241_v3 = vrot.slane %v240_v1, 4 }
 0x1cd   :  { %v237_v4 = vadd.f32 %v236_v2, %v235_v0  ;;  %v242_v5 = vadd.f32 %v241_v3, %v240_v1 }
 0x1cf   :  { %v243_v7 = vrot.slane %v242_v5, 2  ;;  %v238_v9 = vrot.slane %v237_v4, 1 }
 0x1d1   :  { %v239_v10 = vadd.f32 %v238_v9, %v237_v4  ;;  %v244_v11 = vadd.f32 %v243_v7, %v242_v5 }
 0x1d3   :  { %348 = vrcp.f32 %v239_v10  ;;  %v245_v12 = vrot.slane %v244_v11, 1 }
 0x1d5   :  { %v246_v13 = vadd.f32 %v245_v12, %v244_v11 }
 0x1d7   :  { %350 = vrcp.f32 %v246_v13 }
 0x1dd   :  { %v349_v14 = vpop.eup %348 }
 0x1de   :  { %v249_v15 = vmul.f32 %v349_v14, %v345_v60 }
 0x1e0   :  { %253 = vperm.xlu1 %338, %v249_v15  }
 0x1e1   :  { %v351_v16 = vpop.eup %350 }
 0x1e2   :  { %v250_v17 = vmul.f32 %v351_v16, %v347_v63 }
 0x1e4   :  { %258 = vperm.xlu1 %338, %v250_v17  }
 0x25f   :  { %v254_v18 = vpop.permute.xlu1 %253 }
 0x260   :  { %v261_v19 = vmul.f32 %v254_v18, %v493_v6 }
 0x262   :  { %v263_v20 = vsel %vm67_vm0, %v261_v19, 0.0 }
 0x263   :  { %v264_v21 = vrot.slane %v263_v20, 4  ;;  %v259_v22 = vpop.permute.xlu1 %258 }
 0x264   :  { %v262_v23 = vmul.f32 %v259_v22, %v497_v8 }
 0x265   :  { %v265_v24 = vadd.f32 %v264_v21, %v263_v20 }
 0x266   :  { %v270_v25 = vsel %vm67_vm0, %v262_v23, 0.0 }
 0x267   :  { %v266_v26 = vrot.slane %v265_v24, 2  ;;  %v271_v27 = vrot.slane %v270_v25, 4 }
 0x269   :  { %v267_v28 = vadd.f32 %v266_v26, %v265_v24  ;;  %v272_v29 = vadd.f32 %v271_v27, %v270_v25 }
 0x26b   :  { %v273_v30 = vrot.slane %v272_v29, 2  ;;  %v268_v31 = vrot.slane %v267_v28, 1 }
 0x26d   :  { %v274_v32 = vadd.f32 %v273_v30, %v272_v29  ;;  %v269_v6 = vadd.f32 %v268_v31, %v267_v28 }
 0x26f   :  { %v275_v33 = vrot.slane %v274_v32, 1 }
 0x271   :  { %v276_v34 = vadd.f32 %v275_v33, %v274_v32 }
 0x273   :  { %v280_v35 = vsel %vm279_vm4, %v276_v34, %v269_v6 }
 0x274   :  { %283 = vst.msk [vmem:[#allocation8] sm:$0x3] %vm282_vm5, %v280_v35 }
 0x275   :  { %407 = shalt.err (!%p404_p6)
}
 0x276   :  { %s408_s30 = scalar_lea.hbm %s538_s6, 32 }
 0x277   :  { %p409_p7 = scmp.ne.s32.totalorder %s538_s6, %s408_s30  ;;  %p412_p8 = scmp.lt.u32.totalorder %s408_s30, %s538_s6 }
 0x279   :  { %p414_p9 = pnand %p412_p8, %p409_p7 }
 0x27b   :  { %417 = shalt.err (!%p414_p9)
}
 0x27c   :  { %293 = dma.vmem_to_hbm [thread:$0]  %s291_s26, 32, %s538_s6, [#allocation5]  }
 0x27d   :  { %422 = dma.done.wait [#allocation5], 32  }
 0x27e   :  { %423 = vsyncadd [#allocation5], 4294967264 }
 0x27f   :  { %297 = vsyncpa [#allocation4], 1 }
 0x280   :  { %298 = vsyncpa [#allocation7], 1 }
 0x281   :  { %299 = vsyncpa [#allocation5], 1 }

</bundles_post_ra>
